<compile_context>
chip_gen: v7x
topology: tpu7x:2x2x1
jax: 0.10.0
libtpu: 0.0.40
codegen_flags: <defaults>
</compile_context>

<pallas_src>
import functools

import jax
import jax.numpy as jnp
from jax.experimental import pallas as pl
from jax.experimental.pallas import tpu as pltpu


# ----------------------------------------------------------------------------
# Generation-aware VMEM budgets (v5e/v6e: 128 MiB, v7x: 64 MiB per TensorCore).
# ----------------------------------------------------------------------------
def _detect_vmem_capacity_bytes():
    try:
        cap = int(pltpu.get_tpu_info().vmem_capacity_bytes)
        if cap > 0:
            return cap
    except Exception:
        pass
    return 64 << 20  # conservative fallback: v7x per-TensorCore VMEM


_VMEM_CAP_BYTES = _detect_vmem_capacity_bytes()
# What we tell the compiler it may use (default scoped limit is only 32 MiB).
_VMEM_LIMIT_BYTES = int(min(_VMEM_CAP_BYTES * 3 // 4, 100 << 20))
# What the tile picker may spend on double-buffered tiles + scratch.
_TILE_BUDGET_BYTES = int(min(_VMEM_CAP_BYTES // 2, 64 << 20))


def _round_up(x, m):
    return ((x + m - 1) // m) * m


def _pick_tiles(N, V, D, w_itemsize, out_itemsize, budget_bytes, row_tile, vocab_tile):
    """Choose (tm, n_pad, tv, v_pad) so the double-buffered weight/logits tiles plus the
    gathered-embedding scratch fit in `budget_bytes` of VMEM."""
    # Row tile: as large as requested/needed; 256-aligned when big (MXU friendly),
    # otherwise a multiple of 8 sublanes.
    tm = min(row_tile, _round_up(N, 8))
    if tm > 256:
        tm = (tm // 256) * 256

    def vmem_need(tm_, tv_):
        return (2 * tv_ * D * w_itemsize          # weight vocab tile, double-buffered
                + 2 * tm_ * tv_ * out_itemsize    # logits tile, double-buffered
                + tm_ * D * w_itemsize)           # gathered embedding scratch

    # Shrink tm only if even the smallest vocab tile would not fit.
    while tm > 8 and vmem_need(tm, 128) > budget_bytes:
        tm = max(8, ((tm // 2) // 8) * 8)
    n_pad = _round_up(N, tm)

    # Vocab tile: largest 128-multiple <= request that fits the budget.
    tv = min(_round_up(vocab_tile, 128), _round_up(V, 128))
    while tv > 128 and vmem_need(tm, tv) > budget_bytes:
        tv = max(128, _round_up(tv // 2, 128))
    v_pad = _round_up(V, tv)  # pad vocab instead of asserting divisibility
    return tm, n_pad, tv, v_pad


# ----------------------------------------------------------------------------
# Fused kernel: per (row-block i, vocab-block j) grid step.
#   tok_ref    : (n_pad,) int32 token ids, scalar-prefetched into SMEM
#   w_hbm_ref  : (v_pad, D) weight, left in HBM (pl.ANY) -> source of the row gather
#   w_tile_ref : (tv, D)    weight vocab tile (auto-pipelined into VMEM)
#   out_ref    : (tm, tv)   logits tile
#   emb_ref    : (tm, D)    VMEM scratch holding the gathered embeddings of row block i
#   sem        : DMA semaphore shared by the per-row gather copies
# ----------------------------------------------------------------------------
def fused_embed_lm_head_kernel(tok_ref, w_hbm_ref, w_tile_ref, out_ref, emb_ref, sem):
    i = pl.program_id(0)          # row block
    j = pl.program_id(1)          # vocab block
    tm = emb_ref.shape[0]

    # Gather this row block's embedding rows once (first vocab tile only); the scratch
    # then stays resident for every vocab tile of row block i.
    @pl.when(j == 0)
    def _gather():
        base = i * tm

        def issue(r, carry):
            row = tok_ref[base + r]
            pltpu.make_async_copy(
                w_hbm_ref.at[pl.ds(row, 1), :], emb_ref.at[pl.ds(r, 1), :], sem
            ).start()
            return carry

        jax.lax.fori_loop(0, tm, issue, 0)

        def drain(r, carry):
            row = tok_ref[base + r]
            pltpu.make_async_copy(
                w_hbm_ref.at[pl.ds(row, 1), :], emb_ref.at[pl.ds(r, 1), :], sem
            ).wait()
            return carry

        jax.lax.fori_loop(0, tm, drain, 0)

    # TODO(synk): abstract backbone_forward -> identity (scratch used as-is).
    # logits tile = emb @ W_tile.T  (contract over D on the MXU, f32 accumulation)
    out_ref[...] = jax.lax.dot_general(
        emb_ref[...], w_tile_ref[...],
        dimension_numbers=(((1,), (1,)), ((), ())),
        preferred_element_type=jnp.float32,
    ).astype(out_ref.dtype)


# ----------------------------------------------------------------------------
# Wrapper: BaseArchitecture.forward(tokens) with share_embeddings=True.
# ----------------------------------------------------------------------------
@functools.partial(jax.jit, static_argnames=("row_tile", "vocab_tile"))
def base_architecture_forward(tokens, weight, *, row_tile=512, vocab_tile=2048):
    B, S = tokens.shape
    V, D = weight.shape
    N = B * S

    tm, n_pad, tv, v_pad = _pick_tiles(
        N, V, D, weight.dtype.itemsize, 4, _TILE_BUDGET_BYTES, row_tile, vocab_tile)

    # Pad token ids with a VALID id (0) so the gather DMAs never read out of bounds;
    # padded rows are sliced off at the end.
    tok_flat = tokens.reshape(N).astype(jnp.int32)
    tok_pad = tok_flat if n_pad == N else jnp.zeros((n_pad,), jnp.int32).at[:N].set(tok_flat)

    # Pad the vocab dimension with zero rows when V is not a multiple of the vocab tile
    # (zero rows -> zero logits beyond V, sliced off below).
    w = weight if v_pad == V else jnp.zeros((v_pad, D), weight.dtype).at[:V, :].set(weight)

    grid = (n_pad // tm, v_pad // tv)

    logits = pl.pallas_call(
        fused_embed_lm_head_kernel,
        out_shape=jax.ShapeDtypeStruct((n_pad, v_pad), jnp.float32),
        grid_spec=pltpu.PrefetchScalarGridSpec(
            num_scalar_prefetch=1,                       # token ids -> SMEM
            grid=grid,
            in_specs=[
                pl.BlockSpec(memory_space=pl.ANY),              # weight kept in HBM (gather src)
                pl.BlockSpec((tv, D), lambda i, j, tok: (j, 0)),  # weight vocab tile
            ],
            out_specs=pl.BlockSpec((tm, tv), lambda i, j, tok: (i, j)),
            scratch_shapes=[
                pltpu.VMEM((tm, D), w.dtype),            # gathered embeddings of row block i
                pltpu.SemaphoreType.DMA,                  # shared DMA semaphore for the gather
            ],
        ),
        compiler_params=pltpu.CompilerParams(
            # rows are independent (shardable across v7x's 2 TCs); the vocab axis carries the
            # gathered-embedding scratch, so it must stay sequential.
            dimension_semantics=("parallel", "arbitrary"),
            vmem_limit_bytes=_VMEM_LIMIT_BYTES,
        ),
    )(tok_pad, w, w)

    return logits[:N, :V].reshape(B, S, V)


if __name__ == "__main__":
    # Small shapes consistent with the module:
    #   tokenizer_vocab_size=256, model_dim=128, batch=2, seq=8
    VOCAB, MODEL_DIM = 256, 128
    B, S = 2, 8

    key = jax.random.PRNGKey(0)
    k_w, k_tok = jax.random.split(key)

    # _init_embeddings: normal(mean=0, std=0.02); shared with lm_head weight.
    weight = 0.02 * jax.random.normal(k_w, (VOCAB, MODEL_DIM), dtype=jnp.float32)
    tokens = jax.random.randint(k_tok, (B, S), 0, VOCAB, dtype=jnp.int32)

    logits = base_architecture_forward(tokens, weight)
    logits = jax.block_until_ready(logits)

    # Reference (pure JAX) check of the same semantics.
    ref_emb = weight[tokens]            # tok_embeddings
    ref_logits = ref_emb @ weight.T     # tied lm_head, no bias
    assert logits.shape == (B, S, VOCAB)
    assert jnp.allclose(logits, ref_logits, atol=1e-4, rtol=1e-4)

    print("KERNEL_OK")
</pallas_src>

<mosaic_0001>
module attributes {stable_mosaic.version = 11 : i64} {
  func.func @fused_embed_lm_head_kernel(%arg0: i32, %arg1: i32, %arg2: memref<16xi32, #tpu.memory_space<smem>>, %arg3: memref<256x128xf32, #tpu.memory_space<any>>, %arg4: memref<256x128xf32, #tpu.memory_space<vmem>>, %arg5: memref<16x256xf32, #tpu.memory_space<vmem>>, %arg6: memref<16x128xf32, #tpu.memory_space<vmem>>, %arg7: memref<!tpu.dma_semaphore, #tpu.memory_space<semaphore_mem>>) attributes {dimension_semantics = [#tpu.dimension_semantics<parallel>, #tpu.dimension_semantics<arbitrary>], iteration_bounds = array<i64: 1, 1>, scalar_prefetch = 1 : i64, scratch_operands = 2 : i64, tpu.core_type = #tpu.core_type<tc>, window_params = [{}, {transform_indices = @transform_1, window_bounds = array<i64: 256, 128>}, {transform_indices = @transform_2, window_bounds = array<i64: 16, 256>}]} {
    %c0_i32 = arith.constant 0 : i32
    %0 = arith.cmpi eq, %arg1, %c0_i32 : i32
    %1 = arith.extui %0 : i1 to i32
    %c0_i32_0 = arith.constant 0 : i32
    %2 = arith.cmpi ne, %1, %c0_i32_0 : i32
    scf.if %2 {
      %c16_i32 = arith.constant 16 : i32
      %7 = arith.muli %arg0, %c16_i32 : i32
      %c0_i32_6 = arith.constant 0 : i32
      %c16_i32_7 = arith.constant 16 : i32
      %8 = arith.addi %c0_i32_6, %c16_i32_7 : i32
      %c1_i32 = arith.constant 1 : i32
      scf.for %arg8 = %c0_i32_6 to %8 step %c1_i32  : i32 {
        %10 = arith.addi %7, %arg8 : i32
        %11 = arith.index_cast %10 : i32 to index
        %12 = memref.load %arg2[%11] : memref<16xi32, #tpu.memory_space<smem>>
        %c0_i32_13 = arith.constant 0 : i32
        %13 = tpu.memref_slice %arg3[%12, %c0_i32_13] : memref<256x128xf32, #tpu.memory_space<any>> -> memref<1x128xf32, #tpu.memory_space<any>>
        %c0_i32_14 = arith.constant 0 : i32
        %14 = tpu.memref_slice %arg6[%arg8, %c0_i32_14] : memref<16x128xf32, #tpu.memory_space<vmem>> -> memref<1x128xf32, #tpu.memory_space<vmem>>
        tpu.enqueue_dma source(%13 : memref<1x128xf32, #tpu.memory_space<any>>) target(%14 : memref<1x128xf32, #tpu.memory_space<vmem>>) target_semaphore(%arg7 : memref<!tpu.dma_semaphore, #tpu.memory_space<semaphore_mem>>)
      }
      %c16_i32_8 = arith.constant 16 : i32
      %c0_i32_9 = arith.constant 0 : i32
      %c16_i32_10 = arith.constant 16 : i32
      %9 = arith.addi %c0_i32_9, %c16_i32_10 : i32
      %c1_i32_11 = arith.constant 1 : i32
      scf.for %arg8 = %c0_i32_9 to %9 step %c1_i32_11  : i32 {
        %10 = arith.addi %7, %arg8 : i32
        %11 = arith.index_cast %10 : i32 to index
        %12 = memref.load %arg2[%11] : memref<16xi32, #tpu.memory_space<smem>>
        %c0_i32_13 = arith.constant 0 : i32
        %13 = tpu.memref_slice %arg3[%12, %c0_i32_13] : memref<256x128xf32, #tpu.memory_space<any>> -> memref<1x128xf32, #tpu.memory_space<any>>
        %c0_i32_14 = arith.constant 0 : i32
        %14 = tpu.memref_slice %arg6[%arg8, %c0_i32_14] : memref<16x128xf32, #tpu.memory_space<vmem>> -> memref<1x128xf32, #tpu.memory_space<vmem>>
        tpu.wait_dma2 semaphore(%arg7 : memref<!tpu.dma_semaphore, #tpu.memory_space<semaphore_mem>>) src(%13 : memref<1x128xf32, #tpu.memory_space<any>>) dst(%14 : memref<1x128xf32, #tpu.memory_space<vmem>>)
      }
      %c16_i32_12 = arith.constant 16 : i32
    } else {
    }
    %c0 = arith.constant 0 : index
    %c0_1 = arith.constant 0 : index
    %3 = vector.load %arg6[%c0, %c0_1] : memref<16x128xf32, #tpu.memory_space<vmem>>, vector<16x128xf32>
    %c0_2 = arith.constant 0 : index
    %c0_3 = arith.constant 0 : index
    %4 = vector.load %arg4[%c0_2, %c0_3] : memref<256x128xf32, #tpu.memory_space<vmem>>, vector<256x128xf32>
    %cst = arith.constant dense<0.000000e+00> : vector<16x256xf32>
    %5 = tpu.matmul %3, %4, %cst {dimension_numbers = #tpu.dot_dimension_numbers<[1], [1], [0], [0], [0, 0, 1, 0], [], []>} : vector<16x128xf32>, vector<256x128xf32>, vector<16x256xf32> -> vector<16x256xf32>
    %c0_4 = arith.constant 0 : index
    %c0_5 = arith.constant 0 : index
    %6 = vector.load %arg5[%c0_4, %c0_5] : memref<16x256xf32, #tpu.memory_space<vmem>>, vector<16x256xf32>
    tpu.vector_store %arg5[%c0_4, %c0_5], %5 {strides = array<i32>} : memref<16x256xf32, #tpu.memory_space<vmem>>, vector<16x256xf32>,
    return
  }
  func.func @transform_1(%arg0: i32, %arg1: i32, %arg2: memref<16xi32, #tpu.memory_space<smem>>) -> (i32, i32) {
    %c0_i32 = arith.constant 0 : i32
    %c0_i32_0 = arith.constant 0 : i32
    return %arg1, %c0_i32 : i32, i32
  }
  func.func @transform_2(%arg0: i32, %arg1: i32, %arg2: memref<16xi32, #tpu.memory_space<smem>>) -> (i32, i32) {
    %c0_i32 = arith.constant 0 : i32
    return %arg0, %arg1 : i32, i32
  }
}

</mosaic_0001>

<bundles_post_ra>
// kernel: base_architecture_forward.1
= control target key start
LH: loop header
LB: loop body
LE: loop exit
PB: predicated region body
PF: predicated region fallthrough
CT: control target
= control target key end

     0   :  { %s507_s0 = inlined_call_operand.vmem [shape: s32[16], index: 0, kind: input, shape index: {}]   ;;  %s508_s1 = inlined_call_operand.hbm [shape: f32[256,128], index: 1, kind: input, shape index: {}, may-alias: {1,2}]   ;;  %s509_s2 = inlined_call_operand.hbm [shape: f32[256,128], index: 2, kind: input, shape index: {}, may-alias: {1,2}]   ;;  %s510_s3 = inlined_call_operand.hbm [shape: f32[16,256], index: 3, kind: output, shape index: {}]  }
   0x1   :  { %s8_s14 = sshll.u32 %s507_s0, 4  ;;  %s9_s14 = int_to_ptr.vmem [resolvable:$true] %s8_s14 }
   0x2   :  { %s329_s15 = scalar_lea.vmem %s9_s14, 16  ;;  %p334_p1 = scmp.lt.s32.totalorder %s9_s14, %s9_s14 }
   0x3   :  { %p330_p0 = scmp.ne.s32.totalorder %s9_s14, %s329_s15  ;;  %p335_p2 = scmp.lt.s32.totalorder %s329_s15, %s329_s15 }
   0x5   :  { %p336_p3 = por %p335_p2, %p334_p1 }
   0x7   :  { %p337_p4 = pnand %p336_p3, %p330_p0 }
   0x9   :  { %340 = shalt.err (!%p337_p4)  }
   0xa   :  { %s433_s16 = smov [#allocation5]  }
   0xb   :  { %11 = dma.vmem_to_smem %s9_s14, 16, %s433_s16, [#allocation4] }
   0xc   :  { %417 = dma.done.wait [#allocation4], 16 }
   0xd   :  { %418 = vsyncadd [#allocation4], 4294967280 }
   0xe   :  { %13 = sfence }
   0xf   :  { %14 = vsyncpa [#allocation7], 0 }
  0x10   :  { %15 = vsyncpa [#allocation8], 0  ;;  %s434_s17 = smov [#allocation6]   ;;  %s341_s20 = scalar_lea.hbm %s509_s2, 4096 }
  0x11   :  { %s21_s18 = sshll.u32 %s434_s17, 4  ;;  %p342_p5 = scmp.ne.s32.totalorder %s509_s2, %s341_s20  ;;  %s22_s18 = int_to_ptr.vmem [resolvable:$true] %s21_s18 }
  0x12   :  { %p345_p6 = scmp.lt.u32.totalorder %s341_s20, %s509_s2 }
  0x14   :  { %p347_p7 = pnand %p345_p6, %p342_p5 }
  0x16   :  { %350 = shalt.err (!%p347_p7)
}
  0x17   :  { %s351_s25 = scalar_lea.vmem %s22_s18, 4096  ;;  %p356_p9 = scmp.lt.s32.totalorder %s22_s18, %s22_s18 }
  0x18   :  { %p352_p8 = scmp.ne.s32.totalorder %s22_s18, %s351_s25  ;;  %p357_p10 = scmp.lt.s32.totalorder %s351_s25, %s351_s25 }
  0x1a   :  { %p358_p11 = por %p357_p10, %p356_p9 }
  0x1c   :  { %p359_p12 = pnand %p358_p11, %p352_p8 }
  0x1e   :  { %362 = shalt.err (!%p359_p12)
}
  0x1f   :  { %s435_s26 = smov 128   ;;  %s436_s27 = smov 8  }
  0x20   :  { %27 = dma.hbm_to_vmem [thread:$0]  %s509_s2, 4096, %s22_s18, [#allocation7], %s435_s26, %s435_s26, %s436_s27  }
  0x21   :  { %419 = dma.done.wait [#allocation7], 4096  }
  0x22   :  { %420 = vsyncadd [#allocation7], 4294963200  ;;  %s476_s30 = smov 0  }
  0x23 LB: > { %s43_s4 = sld [smem:[#allocation5 + %s427_s30]]  ;;  %s46_s5 = scalar_lea.vmem [#allocation2], %s427_s30  ;;  %s427_s30 = sphi %s476_s30, %s41_s30  }
  0x24   : > { %s54_s6 = sshll.u32 %s46_s5, 4  ;;  %s365_s13 = scalar_lea.hbm %s508_s1, 4096  ;;  %s55_s6 = int_to_ptr.vmem [resolvable:$true] %s54_s6 }
  0x29   : > { %s220_s7 = sshll.u32 %s43_s4, 4 }
  0x2a   : > { %s45_s2 = scalar_lea.hbm %s508_s1, %s220_s7 }
  0x2b   : > { %s363_s10 = scalar_lea.hbm %s45_s2, 16  ;;  %p366_p0 = scmp.lt.u32.totalorder %s45_s2, %s508_s1 }
  0x2c   : > { %p364_p13 = scmp.ne.s32.totalorder %s45_s2, %s363_s10  ;;  %p367_p1 = scmp.lt.u32.totalorder %s365_s13, %s363_s10 }
  0x2d   : > { %p369_p3 = scmp.lt.u32.totalorder %s363_s10, %s45_s2 }
  0x2e   : > { %p368_p2 = por %p367_p1, %p366_p0 }
  0x30   : > { %p370_p4 = por %p369_p3, %p368_p2 }
  0x32   : > { %p371_p5 = pnand %p370_p4, %p364_p13 }
  0x34   : > { %374 = shalt.err (!%p371_p5)  }
  0x35   : > { %s375_s16 = scalar_lea.vmem %s55_s6, 16  ;;  %s437_s17 = smov [#allocation2]  }
  0x36   : > { %p376_p6 = scmp.ne.s32.totalorder %s55_s6, %s375_s16  ;;  %s377_s18 = sshll.u32 %s437_s17, 4  ;;  %s378_s18 = int_to_ptr.vmem [resolvable:$false] %s377_s18 }
  0x37   : > { %s379_s19 = scalar_lea.vmem %s378_s18, 256  ;;  %p380_p7 = scmp.lt.s32.totalorder %s55_s6, %s378_s18 }
  0x38   : > { %p381_p8 = scmp.lt.s32.totalorder %s379_s19, %s375_s16 }
  0x3a   : > { %p382_p9 = por %p381_p8, %p380_p7 }
  0x3c   : > { %p383_p10 = pnand %p382_p9, %p376_p6 }
  0x3e   : > { %386 = shalt.err (!%p383_p10)  }
  0x3f   : > { %57 = dma.hbm_to_vmem [thread:$0]  %s45_s2, 16, %s55_s6, [#allocation3] }
  0x40   : > { %s41_s30 = sadd.s32 1, %s427_s30  }
  0x41   : > { %p38_p11 = scmp.ge.s32.totalorder %s41_s30, 16  }
  0x42   :  { %s429_s0 = smov (%p38_p11), 0  }
  0x43   :  { %40 = sbr.rel (!%p38_p11) target bundleno = 35 (0x23), region = 52 }
  0x4a LB: > { %421 = dma.done.wait [#allocation3], 16  ;;  %s431_s0 = sphi %s429_s0, %s63_s0  }
  0x4b   : > { %422 = vsyncadd [#allocation3], 4294967280  ;;  %s63_s0 = sadd.s32 1, %s431_s0  }
  0x4c   : > { %p60_p12 = scmp.ge.s32.totalorder %s63_s0, 16  }
  0x4d   :  { %v87_v0 = vld [vmem:[#allocation6 + $0x80] sm:$0xff] (%p60_p12)  ;;  %v88_v1 = vld [vmem:[#allocation6 + $0x88] sm:$0xff] (%p60_p12)  ;;  %v89_v5 = vld [vmem:[#allocation6 + $0x90] sm:$0xff] (%p60_p12)  ;;  %s438_s1 = smov (%p60_p12), [#allocation9]  }
  0x4e   :  { %62 = sbr.rel (!%p60_p12) target bundleno = 74 (0x4a), region = 63  ;;  %v71_v2 = vld [vmem:[#allocation6] sm:$0xff] (%p60_p12)  ;;  %v258_v3 = vpack.c.bf16 (%p60_p12), %v88_v1, %v87_v0  ;;  %v72_v4 = vld [vmem:[#allocation6 + $0x8] sm:$0xff] (%p60_p12)  ;;  %v90_v6 = vld [vmem:[#allocation6 + $0x98] sm:$0xff] (%p60_p12)  ;;  %s189_s20 = sshll.u32 (%p60_p12), %s438_s1, 4  ;;  %s190_s20 = int_to_ptr.vmem [resolvable:$true] %s189_s20 }
  0x4f   :  { %v260_v7 = vpack.c.bf16 (%p60_p12), %v72_v4, %v71_v2  ;;  %v262_v8 = vpack.c.bf16 (%p60_p12), %v90_v6, %v89_v5  ;;  %v73_v9 = vld [vmem:[#allocation6 + $0x10] sm:$0xff] (%p60_p12)  ;;  %v74_v10 = vld [vmem:[#allocation6 + $0x18] sm:$0xff] (%p60_p12)  ;;  %v91_v11 = vld [vmem:[#allocation6 + $0xa0] sm:$0xff] (%p60_p12)  ;;  %s387_s21 = scalar_lea.vmem (%p60_p12), %s190_s20, 512  ;;  %p392_p0 = scmp.lt.s32.totalorder (%p60_p12), %s190_s20, %s190_s20 }
  0x50   :  { %259 = vmatprep.subr.bf16.mxu0 (%p60_p12), %v258_v3  ;;  %290 = vmatprep.subr.bf16.mxu1 (%p60_p12), %v258_v3  ;;  %v92_v12 = vld [vmem:[#allocation6 + $0xa8] sm:$0xff] (%p60_p12)  ;;  %v264_v13 = vpack.c.bf16 (%p60_p12), %v74_v10, %v73_v9  ;;  %v69_v15 = vld [vmem:[#allocation2] sm:$0xff] (%p60_p12)  ;;  %v70_v16 = vld [vmem:[#allocation2 + $0x8] sm:$0xff] (%p60_p12)  ;;  %p388_p13 = scmp.ne.s32.totalorder (%p60_p12), %s190_s20, %s387_s21  ;;  %p393_p1 = scmp.lt.s32.totalorder (%p60_p12), %s387_s21, %s387_s21 }
  0x51   :  { %261 = vmatpush3.bf16.xpose.msra.mxu0 (%p60_p12), %v260_v7  ;;  %298 = vmatpush3.bf16.xpose.msra.mxu1 (%p60_p12), %v260_v7  ;;  %v266_v14 = vpack.c.bf16 (%p60_p12), %v92_v12, %v91_v11  ;;  %v75_v17 = vld [vmem:[#allocation6 + $0x20] sm:$0xff] (%p60_p12)  ;;  %v76_v18 = vld [vmem:[#allocation6 + $0x28] sm:$0xff] (%p60_p12)  ;;  %v93_v19 = vld [vmem:[#allocation6 + $0xb0] sm:$0xff] (%p60_p12) }
  0x52   :  { %263 = vmatprep.subr.bf16.mxu0 (%p60_p12), %v262_v8  ;;  %291 = vmatprep.subr.bf16.mxu1 (%p60_p12), %v262_v8  ;;  %v94_v20 = vld [vmem:[#allocation6 + $0xb8] sm:$0xff] (%p60_p12)  ;;  %v268_v21 = vpack.c.bf16 (%p60_p12), %v76_v18, %v75_v17  ;;  %v77_v23 = vld [vmem:[#allocation6 + $0x30] sm:$0xff] (%p60_p12)  ;;  %v95_v25 = vld [vmem:[#allocation6 + $0xc0] sm:$0xff] (%p60_p12)  ;;  %p394_p2 = por (%p60_p12), %p393_p1, %p392_p0 }
  0x53   :  { %254 = vmatprep.mubr.f32.mxu0 (%p60_p12), %v69_v15  ;;  %256 = vmatprep.mubr.f32.mxu1 (%p60_p12), %v70_v16  ;;  %v270_v22 = vpack.c.bf16 (%p60_p12), %v94_v20, %v93_v19  ;;  %v78_v24 = vld [vmem:[#allocation6 + $0x38] sm:$0xff] (%p60_p12)  ;;  %v96_v26 = vld [vmem:[#allocation6 + $0xc8] sm:$0xff] (%p60_p12)  ;;  %v79_v29 = vld [vmem:[#allocation6 + $0x40] sm:$0xff] (%p60_p12) }
  0x54   :  { %v272_v27 = vpack.c.bf16 (%p60_p12), %v78_v24, %v77_v23  ;;  %v274_v28 = vpack.c.bf16 (%p60_p12), %v96_v26, %v95_v25  ;;  %v80_v30 = vld [vmem:[#allocation6 + $0x48] sm:$0xff] (%p60_p12)  ;;  %v97_v31 = vld [vmem:[#allocation6 + $0xd0] sm:$0xff] (%p60_p12)  ;;  %v98_v32 = vld [vmem:[#allocation6 + $0xd8] sm:$0xff] (%p60_p12)  ;;  %p395_p3 = pnand (%p60_p12), %p394_p2, %p388_p13 }
  0x55   :  { %v276_v33 = vpack.c.bf16 %v80_v30, %v79_v29  ;;  %v278_v34 = vpack.c.bf16 %v98_v32, %v97_v31  ;;  %v81_v35 = vld [vmem:[#allocation6 + $0x50] sm:$0xff]  ;;  %v82_v36 = vld [vmem:[#allocation6 + $0x58] sm:$0xff]  ;;  %v99_v37 = vld [vmem:[#allocation6 + $0xe0] sm:$0xff] }
  0x56   :  { %v100_v38 = vld [vmem:[#allocation6 + $0xe8] sm:$0xff]  ;;  %v280_v39 = vpack.c.bf16 %v82_v36, %v81_v35  ;;  %v83_v41 = vld [vmem:[#allocation6 + $0x60] sm:$0xff]  ;;  %v101_v43 = vld [vmem:[#allocation6 + $0xf0] sm:$0xff] }
  0x57   :  { %v282_v40 = vpack.c.bf16 %v100_v38, %v99_v37  ;;  %v84_v42 = vld [vmem:[#allocation6 + $0x68] sm:$0xff]  ;;  %v102_v44 = vld [vmem:[#allocation6 + $0xf8] sm:$0xff]  ;;  %v85_v47 = vld [vmem:[#allocation6 + $0x70] sm:$0xff] }
  0x58   :  { %v284_v45 = vpack.c.bf16 %v84_v42, %v83_v41  ;;  %v286_v46 = vpack.c.bf16 %v102_v44, %v101_v43  ;;  %v86_v48 = vld [vmem:[#allocation6 + $0x78] sm:$0xff] }
  0x59   :  { %265 = vmatpush3.bf16.xpose.msra.mxu0 %v264_v13  ;;  %299 = vmatpush3.bf16.xpose.msra.mxu1 %v264_v13  ;;  %v288_v49 = vpack.c.bf16 %v86_v48, %v85_v47 }
  0x5a   :  { %267 = vmatprep.subr.bf16.mxu0 %v266_v14  ;;  %292 = vmatprep.subr.bf16.mxu1 %v266_v14 }
  0x61   :  { %269 = vmatpush3.bf16.xpose.msra.mxu0 %v268_v21  ;;  %300 = vmatpush3.bf16.xpose.msra.mxu1 %v268_v21 }
  0x62   :  { %271 = vmatprep.subr.bf16.mxu0 %v270_v22  ;;  %293 = vmatprep.subr.bf16.mxu1 %v270_v22 }
  0x69   :  { %273 = vmatpush3.bf16.xpose.msra.mxu0 %v272_v27  ;;  %301 = vmatpush3.bf16.xpose.msra.mxu1 %v272_v27 }
  0x6a   :  { %275 = vmatprep.subr.bf16.mxu0 %v274_v28  ;;  %294 = vmatprep.subr.bf16.mxu1 %v274_v28 }
  0x71   :  { %277 = vmatpush3.bf16.xpose.msra.mxu0 %v276_v33  ;;  %302 = vmatpush3.bf16.xpose.msra.mxu1 %v276_v33 }
  0x72   :  { %279 = vmatprep.subr.bf16.mxu0 %v278_v34  ;;  %295 = vmatprep.subr.bf16.mxu1 %v278_v34 }
  0x79   :  { %281 = vmatpush3.bf16.xpose.msra.mxu0 %v280_v39  ;;  %303 = vmatpush3.bf16.xpose.msra.mxu1 %v280_v39 }
  0x7a   :  { %283 = vmatprep.subr.bf16.mxu0 %v282_v40  ;;  %296 = vmatprep.subr.bf16.mxu1 %v282_v40 }
  0x81   :  { %285 = vmatpush3.bf16.xpose.msra.mxu0 %v284_v45  ;;  %304 = vmatpush3.bf16.xpose.msra.mxu1 %v284_v45 }
  0x82   :  { %287 = vmatprep.subr.bf16.mxu0 %v286_v46  ;;  %297 = vmatprep.subr.bf16.mxu1 %v286_v46 }
  0x89   :  { %289 = vmatpush3.bf16.xpose.msra.mxu0 %v288_v49  ;;  %305 = vmatpush3.bf16.xpose.msra.mxu1 %v288_v49 }
  0x90   :  { %255 = vmatmul.mubr.f32.vlgmr.msra.gmra.mrb[0].mxu0 %v69_v15  ;;  %257 = vmatmul.mubr.f32.vlgmr.msra.gmra.mrb[0].mxu1 %v70_v16 }
 0x163   :  { %v169_v50 = vpop.f32.mrb[0].mxu0  ;;  %v175_v51 = vpop.f32.mrb[0].mxu1 }
 0x164   :  { %180 = vst [vmem:[#allocation9] sm:$0xff] %v169_v50  ;;  %182 = vst [vmem:[#allocation9 + $0x10] sm:$0xff] %v175_v51  ;;  %v171_v52 = vpop.f32.mrb[1].mxu0  ;;  %v177_v53 = vpop.f32.mrb[1].mxu1 }
 0x165   :  { %181 = vst [vmem:[#allocation9 + $0x8] sm:$0xff] %v171_v52  ;;  %183 = vst [vmem:[#allocation9 + $0x18] sm:$0xff] %v177_v53 }
 0x166   :  { %398 = shalt.err (!%p395_p3)
}
 0x167   :  { %s399_s24 = scalar_lea.hbm %s510_s3, 512 }
 0x168   :  { %p400_p4 = scmp.ne.s32.totalorder %s510_s3, %s399_s24  ;;  %p403_p5 = scmp.lt.u32.totalorder %s399_s24, %s510_s3 }
 0x16a   :  { %p405_p6 = pnand %p403_p5, %p400_p4 }
 0x16c   :  { %408 = shalt.err (!%p405_p6)
}
 0x16d   :  { %s439_s29 = smov 256   ;;  %s440_s30 = smov 16  }
 0x16e   :  { %195 = dma.vmem_to_hbm [thread:$0]  %s190_s20, 512, %s510_s3, [#allocation8], %s439_s29, %s439_s29, %s440_s30  }
 0x16f   :  { %423 = dma.done.wait [#allocation8], 512  }
 0x170   :  { %424 = vsyncadd [#allocation8], 4294966784 }
 0x171   :  { %199 = vsyncpa [#allocation7], 1 }
 0x172   :  { %200 = vsyncpa [#allocation8], 1 }
 0x173   :  { %201 = vsyncmov [#allocation3] }
 0x176   :  { %s202_s6 = vpop.sfrf %201 }
 0x177   :  { %p221_p7 = scmp.ne.s32.totalorder %s202_s6, 0 }
 0x179   :  { %206 = shalt.err (%p221_p7)  }

</bundles_post_ra>
